<compile_context>
chip_gen: v7x
topology: tpu7x:2x2x1
jax: 0.10.0
libtpu: 0.0.40
codegen_flags: <defaults>
</compile_context>

<pallas_src>
import jax
import jax.numpy as jnp
from jax.experimental import pallas as pl
from jax.experimental.pallas import tpu as pltpu


# ----------------------------- kernel -------------------------------------- #

def _make_gcn_kernel(*, n_k_blocks, rem_k, mxu_dtype, use_cache, has_bias):
    """Builds the fused kernel body (all flags are static / trace-time)."""
    last_k = n_k_blocks - 1

    def kernel(adj_ref, inp_ref, w_ref, bias_ref, o_ref, acc_ref, *cache):
        i = pl.program_id(1)
        k = pl.program_id(2)

        def masked_inp():
            x = inp_ref[...]
            if rem_k:  # ragged last reduction block: zero rows >= N
                rows = jax.lax.broadcasted_iota(jnp.int32, x.shape, 0)
                x = jnp.where((k < last_k) | (rows < rem_k), x, 0)
            return x

        if use_cache:
            sup_ref = cache[0]

            # Fill the persistent support cache only on the first i-sweep.
            @pl.when(i == 0)
            def _fill_support():
                s = jnp.dot(masked_inp(), w_ref[...],
                            preferred_element_type=jnp.float32)
                sup_ref[k] = s.astype(sup_ref.dtype)

            sup = sup_ref[k]
        else:
            # Fallback (cache too big for VMEM): recompute per (i, k) step.
            s = jnp.dot(masked_inp(), w_ref[...],
                        preferred_element_type=jnp.float32)
            sup = s if mxu_dtype is None else s.astype(mxu_dtype)

        a = adj_ref[...]
        if rem_k:  # ragged last reduction block: zero columns >= N
            cols = jax.lax.broadcasted_iota(jnp.int32, a.shape, 1)
            a = jnp.where((k < last_k) | (cols < rem_k), a, 0)
        if mxu_dtype is not None:
            a = a.astype(mxu_dtype)          # on-chip cast, keeps HBM in f32

        part = jnp.dot(a, sup, preferred_element_type=jnp.float32)

        if n_k_blocks == 1:
            # Single reduction step: skip the accumulator round trip.
            if has_bias:
                part = part + bias_ref[...]
            o_ref[...] = part.astype(o_ref.dtype)
        else:
            @pl.when(k == 0)
            def _init_acc():
                acc_ref[...] = jnp.zeros_like(acc_ref)

            acc_ref[...] += part

            @pl.when(k == last_k)
            def _finalize():
                out = acc_ref[...]
                if has_bias:
                    out = out + bias_ref[...]
                o_ref[...] = out.astype(o_ref.dtype)

    return kernel


# ----------------------------- wrapper -------------------------------------- #

def _round_up(x, m):
    return ((x + m - 1) // m) * m


def graph_convolution(inp, adj, weight, bias=None, *, mxu_dtype=jnp.bfloat16,
                      tm=None, tk=None, tn=None, vmem_budget_bytes=40 << 20):
    """GCN layer forward: adj @ (inp @ weight) [+ bias], one fused Pallas call.

    mxu_dtype: dtype fed to the big MXU matmul (default bf16, f32 accumulate);
               pass None for a full-f32 path.
    """
    N, Fi = inp.shape
    assert weight.shape[0] == Fi, "weight must be [in_features, out_features]"
    Fo = weight.shape[1]
    assert adj.shape == (N, N), "adj must be [num_nodes, num_nodes]"
    out_dtype = inp.dtype
    sup_dtype = jnp.dtype(jnp.float32 if mxu_dtype is None else mxu_dtype)

    # ---------------- tile selection (no host-side padding needed) ----------
    if tn is None:
        # Full F_out per tile whenever reasonable => adj streamed from HBM once.
        tn = Fo if Fo <= 512 else 256
    if tm is None:
        if N >= 1024:
            tm = 512
        elif N >= 512:
            tm = 256
        elif N >= 128:
            tm = 128
        else:
            tm = N                       # full dim is always a legal block dim
    if tk is None:
        # tk == N (single k step, no masking) for moderate N, else a 2048-wide
        # 128-aligned reduction tile with in-kernel edge masking.
        tk = N if N <= 2048 else 2048

    adj_b = jnp.dtype(adj.dtype).itemsize
    inp_b = jnp.dtype(inp.dtype).itemsize
    w_b = jnp.dtype(weight.dtype).itemsize
    out_b = jnp.dtype(out_dtype).itemsize
    sup_b = sup_dtype.itemsize

    def _lane(v):
        return _round_up(v, 128)

    def _sub(v):
        return _round_up(v, 8)

    def _ws(tm_, tk_, tn_, cache_):
        nkb = pl.cdiv(N, tk_)
        b = 2 * _sub(tm_) * _lane(tk_) * adj_b           # adj tiles (x2 buffers)
        b += 2 * _sub(tk_) * _lane(Fi) * inp_b           # inp slabs
        b += 2 * _sub(Fi) * _lane(tn_) * w_b             # weight tile
        b += 2 * 8 * _lane(tn_) * 4                      # bias row
        b += 2 * _sub(tm_) * _lane(tn_) * out_b          # output tile
        b += _sub(tm_) * _lane(tn_) * 4                  # f32 accumulator
        if cache_:
            b += nkb * _sub(tk_) * _lane(tn_) * sup_b    # support cache
        return b

    use_cache = True
    # Shrink streaming tiles first (keeps the single adj pass AND the cache).
    while _ws(tm, tk, tn, use_cache) > vmem_budget_bytes and tk >= 1024 and tk % 256 == 0:
        tk //= 2
    while _ws(tm, tk, tn, use_cache) > vmem_budget_bytes and tm >= 256 and tm % 16 == 0:
        tm //= 2
    # If the (N, tn) support cache itself does not fit, drop it and recompute
    # support per i-tile (extra MXU work ~= Fi/tm of the adj matmul).
    if _ws(tm, tk, tn, use_cache) > vmem_budget_bytes:
        use_cache = False

    n_k_blocks = pl.cdiv(N, tk)
    rem_k = N % tk
    grid = (pl.cdiv(Fo, tn), pl.cdiv(N, tm), n_k_blocks)

    has_bias = bias is not None
    bias_row = (bias.astype(jnp.float32).reshape(1, Fo) if has_bias
                else jnp.zeros((1, Fo), jnp.float32))

    # inp is only needed while the support cache is being filled (i == 0);
    # pinning its block index afterwards lets the pipeline skip its DMAs.
    if use_cache:
        inp_index = lambda j, i, k: (jnp.where(i == 0, k, 0), 0)
    else:
        inp_index = lambda j, i, k: (k, 0)

    in_specs = [
        pl.BlockSpec((tm, tk), lambda j, i, k: (i, k)),      # adj tile (streamed once)
        pl.BlockSpec((tk, Fi), inp_index),                   # inp slab
        pl.BlockSpec((Fi, tn), lambda j, i, k: (0, j)),      # weight (VMEM resident)
        pl.BlockSpec((1, tn), lambda j, i, k: (0, j)),       # bias row
    ]
    out_spec = pl.BlockSpec((tm, tn), lambda j, i, k: (i, j))

    scratch_shapes = [pltpu.VMEM((tm, tn), jnp.float32)]     # f32 accumulator
    if use_cache:
        scratch_shapes.append(pltpu.VMEM((n_k_blocks, tk, tn), sup_dtype))

    ws_bytes = _ws(tm, tk, tn, use_cache)
    vmem_limit = int(min(max(32 << 20, ws_bytes + (8 << 20)), 112 << 20))

    grid_j = grid[0]
    flops = 2 * N * N * Fo + (grid_j if use_cache else grid_j * grid[1]) * 2 * N * Fi * Fo
    bytes_accessed = (grid_j * N * N * adj_b + N * Fi * inp_b
                      + Fi * Fo * w_b + N * Fo * out_b)
    cost = pl.CostEstimate(flops=int(flops), transcendentals=0,
                           bytes_accessed=int(bytes_accessed))

    kernel = _make_gcn_kernel(n_k_blocks=n_k_blocks, rem_k=rem_k,
                              mxu_dtype=mxu_dtype, use_cache=use_cache,
                              has_bias=has_bias)

    return pl.pallas_call(
        kernel,
        out_shape=jax.ShapeDtypeStruct((N, Fo), out_dtype),
        grid_spec=pltpu.PrefetchScalarGridSpec(
            num_scalar_prefetch=0,
            grid=grid,
            in_specs=in_specs,
            out_specs=out_spec,
            scratch_shapes=scratch_shapes,
        ),
        compiler_params=pltpu.CompilerParams(
            # j (output-column tiles) is independent -> megacore-parallel when
            # grid_j > 1; i/k are 'arbitrary' (support cache is filled on the
            # i == 0 sweep, k is the accumulated reduction).
            dimension_semantics=("parallel", "arbitrary", "arbitrary"),
            vmem_limit_bytes=vmem_limit,
        ),
        cost_estimate=cost,
    )(adj, inp, weight, bias_row)


# ----------------------------- parameters ---------------------------------- #

def init_graph_convolution_params(key, in_features, out_features, bias=True,
                                  dtype=jnp.float32):
    """Matches nn.init.xavier_uniform_(weight) and zeros bias."""
    bound = (6.0 / (in_features + out_features)) ** 0.5
    w = jax.random.uniform(key, (in_features, out_features),
                           minval=-bound, maxval=bound, dtype=dtype)
    b = jnp.zeros((out_features,), dtype=dtype) if bias else None
    return w, b


# ----------------------------- main ---------------------------------------- #

if __name__ == "__main__":
    hp = jax.lax.Precision.HIGHEST

    def reference(x, a, w, b):
        out = jnp.dot(a, jnp.dot(x, w, precision=hp), precision=hp)
        return out if b is None else out + b

    root = jax.random.PRNGKey(0)
    k1, k2, k3 = jax.random.split(root, 3)

    # ---- Test 1: aligned shapes; f32 path and default bf16 MXU path --------
    n, fi, fo = 256, 64, 128
    k_w, k_x, k_a, k_b = jax.random.split(k1, 4)
    w, _ = init_graph_convolution_params(k_w, fi, fo, bias=True)
    b = 0.01 * jax.random.normal(k_b, (fo,), dtype=jnp.float32)
    x = jax.random.normal(k_x, (n, fi), dtype=jnp.float32)
    a = jax.random.uniform(k_a, (n, n), dtype=jnp.float32)
    a = a / jnp.sum(a, axis=1, keepdims=True)       # row-normalised dense adj
    ref = reference(x, a, w, b)

    out_f32 = jax.block_until_ready(graph_convolution(x, a, w, b, mxu_dtype=None))
    assert out_f32.shape == (n, fo) and out_f32.dtype == jnp.float32
    assert jnp.allclose(out_f32, ref, atol=1e-3, rtol=1e-3), \
        float(jnp.max(jnp.abs(out_f32 - ref)))

    out_bf16 = jax.block_until_ready(graph_convolution(x, a, w, b))  # default bf16 MXU
    assert out_bf16.shape == (n, fo) and out_bf16.dtype == jnp.float32
    assert jnp.allclose(out_bf16, ref, atol=5e-3, rtol=5e-3), \
        float(jnp.max(jnp.abs(out_bf16 - ref)))

    # ---- Test 2: awkward (non-(8,128)-multiple) shapes, no bias ------------
    n2, fi2, fo2 = 250, 60, 100
    k_w2, k_x2, k_a2 = jax.random.split(k2, 3)
    w2 = 0.1 * jax.random.normal(k_w2, (fi2, fo2), dtype=jnp.float32)
    x2 = jax.random.normal(k_x2, (n2, fi2), dtype=jnp.float32)
    a2 = jax.random.uniform(k_a2, (n2, n2), dtype=jnp.float32)
    a2 = a2 / jnp.sum(a2, axis=1, keepdims=True)
    out2 = jax.block_until_ready(graph_convolution(x2, a2, w2, bias=None))
    ref2 = reference(x2, a2, w2, None)
    assert out2.shape == (n2, fo2)
    assert jnp.allclose(out2, ref2, atol=5e-3, rtol=5e-3), \
        float(jnp.max(jnp.abs(out2 - ref2)))

    # ---- Test 3: multi-step reduction with ragged edge masking (tk < N) ----
    n3, fi3, fo3 = 300, 32, 64
    k_w3, k_b3, k_x3, k_a3 = jax.random.split(k3, 4)
    w3, _ = init_graph_convolution_params(k_w3, fi3, fo3, bias=True)
    b3 = 0.01 * jax.random.normal(k_b3, (fo3,), dtype=jnp.float32)
    x3 = jax.random.normal(k_x3, (n3, fi3), dtype=jnp.float32)
    a3 = jax.random.uniform(k_a3, (n3, n3), dtype=jnp.float32)
    a3 = a3 / jnp.sum(a3, axis=1, keepdims=True)
    out3 = jax.block_until_ready(graph_convolution(x3, a3, w3, b3, tk=128))
    ref3 = reference(x3, a3, w3, b3)
    assert out3.shape == (n3, fo3)
    assert jnp.allclose(out3, ref3, atol=5e-3, rtol=5e-3), \
        float(jnp.max(jnp.abs(out3 - ref3)))

    print("KERNEL_OK")
</pallas_src>

<mosaic_0001>
module attributes {stable_mosaic.version = 11 : i64} {
  func.func @kernel(%arg0: i32, %arg1: i32, %arg2: i32, %arg3: memref<128x256xf32, #tpu.memory_space<vmem>>, %arg4: memref<256x64xf32, #tpu.memory_space<vmem>>, %arg5: memref<64x128xf32, #tpu.memory_space<vmem>>, %arg6: memref<1x128xf32, #tpu.memory_space<vmem>>, %arg7: memref<128x128xf32, #tpu.memory_space<vmem>>, %arg8: memref<128x128xf32, #tpu.memory_space<vmem>>, %arg9: memref<1x256x128xf32, #tpu.memory_space<vmem>>) attributes {dimension_semantics = [#tpu.dimension_semantics<parallel>, #tpu.dimension_semantics<arbitrary>, #tpu.dimension_semantics<arbitrary>], iteration_bounds = array<i64: 1, 2, 1>, scalar_prefetch = 0 : i64, scratch_operands = 2 : i64, tpu.core_type = #tpu.core_type<tc>, window_params = [{transform_indices = @transform_0, window_bounds = array<i64: 128, 256>}, {transform_indices = @transform_1, window_bounds = array<i64: 256, 64>}, {transform_indices = @transform_2, window_bounds = array<i64: 64, 128>}, {transform_indices = @transform_3, window_bounds = array<i64: 1, 128>}, {transform_indices = @transform_4, window_bounds = array<i64: 128, 128>}]} {
    %c0_i32 = arith.constant 0 : i32
    %0 = arith.cmpi eq, %arg1, %c0_i32 : i32
    %1 = arith.extui %0 : i1 to i32
    %c0_i32_0 = arith.constant 0 : i32
    %2 = arith.cmpi ne, %1, %c0_i32_0 : i32
    scf.if %2 {
      %c0_8 = arith.constant 0 : index
      %c0_9 = arith.constant 0 : index
      %12 = vector.load %arg4[%c0_8, %c0_9] : memref<256x64xf32, #tpu.memory_space<vmem>>, vector<256x64xf32>
      %c0_10 = arith.constant 0 : index
      %c0_11 = arith.constant 0 : index
      %13 = vector.load %arg5[%c0_10, %c0_11] : memref<64x128xf32, #tpu.memory_space<vmem>>, vector<64x128xf32>
      %cst_12 = arith.constant dense<0.000000e+00> : vector<256x128xf32>
      %14 = tpu.matmul %12, %13, %cst_12 {dimension_numbers = #tpu.dot_dimension_numbers<[1], [0], [0], [1], [0, 0, 1, 1], [], []>} : vector<256x64xf32>, vector<64x128xf32>, vector<256x128xf32> -> vector<256x128xf32>
      %15 = arith.index_cast %arg2 : i32 to index
      %c0_13 = arith.constant 0 : index
      %c0_14 = arith.constant 0 : index
      %16 = vector.load %arg9[%15, %c0_13, %c0_14] : memref<1x256x128xf32, #tpu.memory_space<vmem>>, vector<1x256x128xf32>
      %17 = vector.shape_cast %16 : vector<1x256x128xf32> to vector<256x128xf32>
      %18 = vector.shape_cast %14 : vector<256x128xf32> to vector<1x256x128xf32>
      tpu.vector_store %arg9[%15, %c0_13, %c0_14], %18 {strides = array<i32>} : memref<1x256x128xf32, #tpu.memory_space<vmem>>, vector<1x256x128xf32>,
    } else {
    }
    %3 = arith.index_cast %arg2 : i32 to index
    %c0 = arith.constant 0 : index
    %c0_1 = arith.constant 0 : index
    %4 = vector.load %arg9[%3, %c0, %c0_1] : memref<1x256x128xf32, #tpu.memory_space<vmem>>, vector<1x256x128xf32>
    %5 = vector.shape_cast %4 : vector<1x256x128xf32> to vector<256x128xf32>
    %c0_2 = arith.constant 0 : index
    %c0_3 = arith.constant 0 : index
    %6 = vector.load %arg3[%c0_2, %c0_3] : memref<128x256xf32, #tpu.memory_space<vmem>>, vector<128x256xf32>
    %cst = arith.constant dense<0.000000e+00> : vector<128x128xf32>
    %7 = tpu.matmul %6, %5, %cst {dimension_numbers = #tpu.dot_dimension_numbers<[1], [0], [0], [1], [0, 0, 1, 1], [], []>} : vector<128x256xf32>, vector<256x128xf32>, vector<128x128xf32> -> vector<128x128xf32>
    %c0_4 = arith.constant 0 : index
    %c0_5 = arith.constant 0 : index
    %8 = vector.load %arg6[%c0_4, %c0_5] : memref<1x128xf32, #tpu.memory_space<vmem>>, vector<1x128xf32>
    %9 = vector.broadcast %8 : vector<1x128xf32> to vector<128x128xf32>
    %10 = arith.addf %7, %9 : vector<128x128xf32>
    %c0_6 = arith.constant 0 : index
    %c0_7 = arith.constant 0 : index
    %11 = vector.load %arg7[%c0_6, %c0_7] : memref<128x128xf32, #tpu.memory_space<vmem>>, vector<128x128xf32>
    tpu.vector_store %arg7[%c0_6, %c0_7], %10 {strides = array<i32>} : memref<128x128xf32, #tpu.memory_space<vmem>>, vector<128x128xf32>,
    return
  }
  func.func @transform_0(%arg0: i32, %arg1: i32, %arg2: i32) -> (i32, i32) {
    %c0_i32 = arith.constant 0 : i32
    return %arg1, %arg2 : i32, i32
  }
  func.func @transform_1(%arg0: i32, %arg1: i32, %arg2: i32) -> (i32, i32) {
    %c0_i32 = arith.constant 0 : i32
    %0 = arith.cmpi eq, %arg1, %c0_i32 : i32
    %c0_i32_0 = arith.constant 0 : i32
    %1 = arith.select %0, %arg2, %c0_i32_0 : i32
    %c0_i32_1 = arith.constant 0 : i32
    %c0_i32_2 = arith.constant 0 : i32
    return %1, %c0_i32_1 : i32, i32
  }
  func.func @transform_2(%arg0: i32, %arg1: i32, %arg2: i32) -> (i32, i32) {
    %c0_i32 = arith.constant 0 : i32
    %c0_i32_0 = arith.constant 0 : i32
    return %c0_i32, %arg0 : i32, i32
  }
  func.func @transform_3(%arg0: i32, %arg1: i32, %arg2: i32) -> (i32, i32) {
    %c0_i32 = arith.constant 0 : i32
    %c0_i32_0 = arith.constant 0 : i32
    return %c0_i32, %arg0 : i32, i32
  }
  func.func @transform_4(%arg0: i32, %arg1: i32, %arg2: i32) -> (i32, i32) {
    %c0_i32 = arith.constant 0 : i32
    return %arg1, %arg0 : i32, i32
  }
}

</mosaic_0001>

<bundles_post_ra>
// kernel: tpu_custom_call.1
= control target key start
LH: loop header
LB: loop body
LE: loop exit
PB: predicated region body
PF: predicated region fallthrough
CT: control target
= control target key end

     0   :  { %9 = vsyncpa [#allocation5], 0  ;;  %s2019_s0 = inlined_call_operand.hbm [shape: f32[256,256], index: 0, kind: input, shape index: {}]   ;;  %s2020_s1 = inlined_call_operand.vmem [shape: f32[256,64], index: 1, kind: input, shape index: {}]   ;;  %s2021_s2 = inlined_call_operand.vmem [shape: f32[64,128], index: 2, kind: input, shape index: {}]   ;;  %s2022_s3 = inlined_call_operand.vmem [shape: f32[1,128], index: 3, kind: input, shape index: {}]   ;;  %s2023_s4 = inlined_call_operand.hbm [shape: f32[256,128], index: 4, kind: output, shape index: {}]  }
   0x1   :  { %11 = vsyncpa [#allocation5 + $0x1], 0 }
   0x2   :  { %12 = vsyncpa [#allocation6], 0 }
   0x3   :  { %14 = vsyncpa [#allocation6 + $0x1], 0  ;;  %s1616_s15 = smov 0   ;;  %s1618_s16 = smov 0  }
   0x4   :  { %s1620_s17 = smov 0   ;;  %s1622_s18 = smov 0  }
   0x5   :  { %s1624_s19 = smov 0   ;;  %s1626_s20 = smov 0  }
   0x6 LB: > { %s1093_s21 = sadd.s32 4294967295, %s1583_s20   ;;  %s1094_s22 = sadd.s32 4294967294, %s1583_s20   ;;  %s1583_s20 = sphi %s1626_s20, %s20_s20   ;;  %s1579_s19 = sphi %s1624_s19, %s2038_s19   ;;  %s1575_s18 = sphi %s1622_s18, %s2037_s18   ;;  %s1571_s17 = sphi %s1620_s17, %s2036_s17   ;;  %s1567_s16 = sphi %s1618_s16, %s2035_s16   ;;  %s1563_s15 = sphi %s1616_s15, %s2034_s15  }
   0x7   : > { %s35_s23 = sadd.s32 1, %s1579_s19  ;;  %s48_s24 = sadd.s32 1, %s1571_s17 }
   0x8   : > { %p37_p0 = scmp.ge.s32.totalorder %s35_s23, 2  ;;  %p55_p1 = scmp.ne.s32.totalorder %s1571_s17, %s1567_s16 }
   0x9   : > { %p56_p2 = scmp.eq.s32.totalorder %s1583_s20, 0  ;;  %p61_p3 = scmp.ne.s32.totalorder %s1567_s16, %s1563_s15 }
   0xa   : > { %s2040_s23 = smov (%p37_p0, %s35_s23), 0  ;;  %p62_p5 = scmp.eq.s32.totalorder %s1093_s21, 0 }
   0xb   : > { %p1657_p4 = por %p56_p2, %p55_p1  ;;  %s43_s26 = ssub.s32 %s1579_s19, %s2040_s23 }
   0xc   : > { %p169_p6 = scmp.eq.s32.totalorder %s1093_s21, 1  ;;  %p46_p7 = scmp.eq.s32.totalorder %s43_s26, 0 }
   0xd   : > { %p1663_p8 = por %p62_p5, %p61_p3  ;;  %p175_p10 = scmp.eq.s32.totalorder %s1094_s22, 1 }
   0xe   : > { %p1667_p9 = por %p169_p6, %p55_p1  ;;  %p1417_p13 = scmp.lt.s32.totalorder %s1583_s20, 2 }
   0xf   : > { %s1672_s29 = scalar_select %p46_p7, %s1571_s17, %s48_s24  }
  0x10   : > { %s2027_s28 = scalar_select %p1667_p9, 1, 0 }
  0x11   : > { %p1674_p11 = por %p175_p10, %p61_p3  ;;  %s208_s5 = sand.u32 1, %s1571_s17  }
  0x12   : > { %s1099_s6 = sshll.u32 %s208_s5, 8  ;;  %s1147_s7 = sshll.u32 %s1579_s19, 12 }
  0x13   : > { %s2028_s30 = scalar_select %p1674_p11, 1, 0 }
  0x14   : > { %s1685_s10 = scalar_lea.hbm %s2019_s0, %s1147_s7  ;;  %s212_s11 = scalar_lea.vmem [#allocation4], %s1099_s6 }
  0x15   : > { %s222_s12 = sshll.u32 %s212_s11, 4  ;;  %p1691_p0 = pnand %p1417_p13, %p1657_p4  ;;  %s1687_s12 = int_to_ptr.vmem [resolvable:$true] %s222_s12 }
  0x16   : > { %s1696_s14 = scalar_lea.sflag [#allocation5], %s208_s5  ;;  %s1471_s21 = scalar_lea.hbm %s1685_s10, 4096 }
  0x17   : > { %p1472_p2 = scmp.ne.s32.totalorder %s1685_s10, %s1471_s21  ;;  %p1473_p3 = pneg %p1691_p0 }
  0x18   : > { %s1476_s25 = scalar_lea.hbm %s2019_s0, 8192  ;;  %p1477_p4 = scmp.lt.u32.totalorder %s1685_s10, %s2019_s0 }
  0x19   : > { %p1474_p5 = pnand %p1473_p3, %p1472_p2  ;;  %p1478_p7 = scmp.lt.u32.totalorder %s1476_s25, %s1471_s21 }
  0x1a   : > { %p1480_p13 = scmp.lt.u32.totalorder %s1471_s21, %s1685_s10 }
  0x1b   : > { %p1475_p6 = pneg %p1474_p5  ;;  %p1479_p10 = por %p1478_p7, %p1477_p4 }
  0x1d   : > { %p1481_p12 = por %p1480_p13, %p1479_p10 }
  0x1f   : > { %p1482_p1 = pnand %p1481_p12, %p1475_p6 }
  0x21   : > { %1485 = shalt.err (!%p1482_p1)
}
  0x22   : > { %s1486_s5 = scalar_lea.vmem %s1687_s12, 4096  ;;  %s1585_s7 = smov [#allocation4]  }
  0x23   : > { %p1487_p2 = scmp.ne.s32.totalorder %s1687_s12, %s1486_s5  ;;  %s1491_s8 = sshll.u32 %s1585_s7, 4  ;;  %s1492_s8 = int_to_ptr.vmem [resolvable:$false] %s1491_s8 }
  0x24   : > { %s1493_s9 = scalar_lea.vmem %s1492_s8, 8192  ;;  %p1494_p9 = scmp.lt.s32.totalorder %s1687_s12, %s1492_s8 }
  0x25   : > { %p1489_p5 = pnand %p1487_p2, %p1473_p3  ;;  %p1495_p4 = scmp.lt.s32.totalorder %s1493_s9, %s1486_s5 }
  0x27   : > { %p1490_p11 = pneg %p1489_p5  ;;  %p1496_p7 = por %p1495_p4, %p1494_p9 }
  0x29   : > { %p1497_p10 = pnand %p1496_p7, %p1490_p11 }
  0x2b   : > { %1500 = shalt.err (!%p1497_p10)
}
  0x2c   : > { %s1586_s11 = smov 256   ;;  %s1587_s21 = smov 16  }
  0x2d   : > { %1412 = dma.hbm_to_vmem [thread:$0]  (!%p1691_p0), %s1685_s10, 4096, %s1687_s12, %s1696_s14, %s1586_s11, %s1586_s11, %s1587_s21  }
  0x2e   : > { %p243_p12 = scmp.lt.s32.totalorder %s1583_s20, 3  ;;  %p2030_p1 = scmp.ge.s32.totalorder %s1583_s20, 1 }
  0x30   : > { %p244_p3 = pnand %p2030_p1, %p243_p12 }
  0x31   : > { %s1728_s22 = sand.u32 (!%p244_p3), 1, %s1567_s16  }
  0x32   : > { %247 = sbr.rel (%p244_p3) target bundleno = 615 (0x267), region = 36  ;;  %s1105_s24 = sshll.u32 (!%p244_p3), %s1728_s22, 8 }
  0x33   : > { %s250_s25 = scalar_lea.sflag (!%p244_p3), [#allocation5], %s1728_s22  ;;  %s1732_s26 = scalar_lea.vmem (!%p244_p3), [#allocation4], %s1105_s24 }
  0x39   : > { %1554 = dma.done.wait (%p1663_p8), %s250_s25, 4096  }
  0x3a   : > { %1556 = vsyncadd (%p1663_p8), %s250_s25, 4294963200  ;;  %s1106_s10 = sshll.u32 %s1728_s22, 7  ;;  %p1107_p9 = scmp.ne.s32.totalorder %s1575_s18, 0 }
  0x3b   : > { %s1739_s12 = scalar_lea.vmem [#allocation7], %s1106_s10  ;;  %v348_v0 = vld [vmem:[%s2021_s2] sm:$0xff] (!%p1107_p9)  ;;  %v349_v1 = vld [vmem:[%s2021_s2 + $0x8] sm:$0xff] (!%p1107_p9)  ;;  %v350_v2 = vld [vmem:[%s2021_s2 + $0x10] sm:$0xff] (!%p1107_p9)  ;;  %vm356_vm0 = vcmask (!%p1107_p9), 523264  }
  0x3c   : > { %315 = sbr.rel (%p1107_p9) target bundleno = 320 (0x140), region = 44  ;;  %v1333_v3 = vpack.c.bf16 (!%p1107_p9), %v349_v1, %v348_v0  ;;  %v351_v4 = vld [vmem:[%s2021_s2 + $0x18] sm:$0xff] (!%p1107_p9)  ;;  %v352_v6 = vld [vmem:[%s2021_s2 + $0x20] sm:$0xff] (!%p1107_p9)  ;;  %v353_v7 = vld [vmem:[%s2021_s2 + $0x28] sm:$0xff] (!%p1107_p9) }
  0x3d   : > { %v1337_v5 = vpack.c.bf16 (!%p1107_p9), %v351_v4, %v350_v2  ;;  %v316_v8 = vld [vmem:[%s2020_s1] sm:$0xff] (!%p1107_p9)  ;;  %v1341_v10 = vpack.c.bf16 (!%p1107_p9), %v353_v7, %v352_v6  ;;  %v354_v11 = vld [vmem:[%s2021_s2 + $0x30] sm:$0xff] (!%p1107_p9)  ;;  %v355_v12 = vld [vmem:[%s2021_s2 + $0x38] sm:$0xff] (!%p1107_p9) }
  0x3e   : > { %1334 = vmatprep.subr.bf16.mxu0 (!%p1107_p9), %v1333_v3  ;;  %1381 = vmatprep.subr.bf16.mxu1 (!%p1107_p9), %v1333_v3  ;;  %v332_v9 = vld [vmem:[%s2020_s1 + $0x80] sm:$0xff] (!%p1107_p9)  ;;  %v1345_v13 = vpack.c.bf16 (!%p1107_p9), %v355_v12, %v354_v11  ;;  %v317_v14 = vld [vmem:[%s2020_s1 + $0x8] sm:$0xff] (!%p1107_p9)  ;;  %v318_v16 = vld [vmem:[%s2020_s1 + $0x10] sm:$0xff] (!%p1107_p9) }
  0x3f   : > { %1336 = vmatpush3.bf16.msra.mxu0 (!%p1107_p9), %v1333_v3  ;;  %1385 = vmatpush3.bf16.msra.mxu1 (!%p1107_p9), %v1333_v3  ;;  %v333_v15 = vld [vmem:[%s2020_s1 + $0x88] sm:$0xff] (!%p1107_p9)  ;;  %v334_v17 = vld [vmem:[%s2020_s1 + $0x90] sm:$0xff] (!%p1107_p9)  ;;  %v319_v18 = vld [vmem:[%s2020_s1 + $0x18] sm:$0xff] (!%p1107_p9) }
  0x40   : > { %1338 = vmatprep.subr.bf16.mxu0 (!%p1107_p9), %v1337_v5  ;;  %1382 = vmatprep.subr.bf16.mxu1 (!%p1107_p9), %v1337_v5  ;;  %v335_v19 = vld [vmem:[%s2020_s1 + $0x98] sm:$0xff] (!%p1107_p9)  ;;  %v320_v20 = vld [vmem:[%s2020_s1 + $0x20] sm:$0xff] (!%p1107_p9)  ;;  %v321_v22 = vld [vmem:[%s2020_s1 + $0x28] sm:$0xff] (!%p1107_p9) }
  0x41   : > { %1285 = vmatprep.mubr.msk.f32.mxu0 (!%p1107_p9), %vm356_vm0, %v316_v8  ;;  %1309 = vmatprep.mubr.msk.f32.mxu1 (!%p1107_p9), %vm356_vm0, %v332_v9  ;;  %v336_v21 = vld [vmem:[%s2020_s1 + $0xa0] sm:$0xff] (!%p1107_p9)  ;;  %v337_v23 = vld [vmem:[%s2020_s1 + $0xa8] sm:$0xff] (!%p1107_p9)  ;;  %v322_v24 = vld [vmem:[%s2020_s1 + $0x30] sm:$0xff] (!%p1107_p9) }
  0x42   : > { %v338_v25 = vld [vmem:[%s2020_s1 + $0xb0] sm:$0xff] (!%p1107_p9)  ;;  %v323_v26 = vld [vmem:[%s2020_s1 + $0x38] sm:$0xff] (!%p1107_p9)  ;;  %v324_v28 = vld [vmem:[%s2020_s1 + $0x40] sm:$0xff] (!%p1107_p9) }
  0x43   : > { %1340 = vmatpush3.bf16.msra.mxu0 %v1337_v5  ;;  %1386 = vmatpush3.bf16.msra.mxu1 %v1337_v5  ;;  %v339_v27 = vld [vmem:[%s2020_s1 + $0xb8] sm:$0xff]  ;;  %v340_v29 = vld [vmem:[%s2020_s1 + $0xc0] sm:$0xff]  ;;  %v325_v30 = vld [vmem:[%s2020_s1 + $0x48] sm:$0xff] }
  0x44   : > { %1342 = vmatprep.subr.bf16.mxu0 %v1341_v10  ;;  %1383 = vmatprep.subr.bf16.mxu1 %v1341_v10  ;;  %v341_v31 = vld [vmem:[%s2020_s1 + $0xc8] sm:$0xff]  ;;  %v326_v32 = vld [vmem:[%s2020_s1 + $0x50] sm:$0xff]  ;;  %v327_v34 = vld [vmem:[%s2020_s1 + $0x58] sm:$0xff] }
  0x45   : > { %v342_v33 = vld [vmem:[%s2020_s1 + $0xd0] sm:$0xff]  ;;  %v343_v35 = vld [vmem:[%s2020_s1 + $0xd8] sm:$0xff]  ;;  %v328_v36 = vld [vmem:[%s2020_s1 + $0x60] sm:$0xff] }
  0x46   : > { %v344_v37 = vld [vmem:[%s2020_s1 + $0xe0] sm:$0xff]  ;;  %v329_v38 = vld [vmem:[%s2020_s1 + $0x68] sm:$0xff]  ;;  %v330_v40 = vld [vmem:[%s2020_s1 + $0x70] sm:$0xff] }
  0x47   : > { %1344 = vmatpush3.bf16.msra.mxu0 %v1341_v10  ;;  %1387 = vmatpush3.bf16.msra.mxu1 %v1341_v10  ;;  %v345_v39 = vld [vmem:[%s2020_s1 + $0xe8] sm:$0xff]  ;;  %v346_v41 = vld [vmem:[%s2020_s1 + $0xf0] sm:$0xff]  ;;  %v331_v42 = vld [vmem:[%s2020_s1 + $0x78] sm:$0xff] }
  0x48   : > { %1346 = vmatprep.subr.bf16.mxu0 %v1345_v13  ;;  %1384 = vmatprep.subr.bf16.mxu1 %v1345_v13  ;;  %v347_v43 = vld [vmem:[%s2020_s1 + $0xf8] sm:$0xff] }
  0x4b   : > { %1348 = vmatpush3.bf16.msra.mxu0 %v1345_v13  ;;  %1388 = vmatpush3.bf16.msra.mxu1 %v1345_v13 }
  0x4e   : > { %1286 = vmatmul.mubr.msk.f32.vlgmr.msra.gmra.mrb[0].mxu0 %vm356_vm0, %v317_v14  ;;  %1310 = vmatmul.mubr.msk.f32.vlgmr.msra.gmra.mrb[0].mxu1 %vm356_vm0, %v333_v15 }
  0x4f   : > { %1288 = vmatprep.mubr.msk.f32.mxu0 %vm356_vm0, %v318_v16  ;;  %1312 = vmatprep.mubr.msk.f32.mxu1 %vm356_vm0, %v334_v17 }
  0x52   : > { %1289 = vmatmul.mubr.msk.f32.gmra.mrb[2].mxu0 %vm356_vm0, %v319_v18  ;;  %1313 = vmatmul.mubr.msk.f32.gmra.mrb[2].mxu1 %vm356_vm0, %v335_v19 }
  0x53   : > { %1291 = vmatprep.mubr.msk.f32.mxu0 %vm356_vm0, %v320_v20  ;;  %1315 = vmatprep.mubr.msk.f32.mxu1 %vm356_vm0, %v336_v21 }
  0x56   : > { %1292 = vmatmul.mubr.msk.f32.gmra.mrb[4].mxu0 %vm356_vm0, %v321_v22  ;;  %1316 = vmatmul.mubr.msk.f32.gmra.mrb[4].mxu1 %vm356_vm0, %v337_v23 }
  0x57   : > { %1294 = vmatprep.mubr.msk.f32.mxu0 %vm356_vm0, %v322_v24  ;;  %1318 = vmatprep.mubr.msk.f32.mxu1 %vm356_vm0, %v338_v25 }
  0x5a   : > { %1295 = vmatmul.mubr.msk.f32.gmra.mrb[6].mxu0 %vm356_vm0, %v323_v26  ;;  %1319 = vmatmul.mubr.msk.f32.gmra.mrb[6].mxu1 %vm356_vm0, %v339_v27 }
  0x5b   : > { %1297 = vmatprep.mubr.msk.f32.mxu0 %vm356_vm0, %v324_v28  ;;  %1321 = vmatprep.mubr.msk.f32.mxu1 %vm356_vm0, %v340_v29 }
  0x5e   : > { %1298 = vmatmul.mubr.msk.f32.gmra.mrb[8].mxu0 %vm356_vm0, %v325_v30  ;;  %1322 = vmatmul.mubr.msk.f32.gmra.mrb[8].mxu1 %vm356_vm0, %v341_v31 }
  0x5f   : > { %1300 = vmatprep.mubr.msk.f32.mxu0 %vm356_vm0, %v326_v32  ;;  %1324 = vmatprep.mubr.msk.f32.mxu1 %vm356_vm0, %v342_v33 }
  0x62   : > { %1301 = vmatmul.mubr.msk.f32.gmra.mrb[10].mxu0 %vm356_vm0, %v327_v34  ;;  %1325 = vmatmul.mubr.msk.f32.gmra.mrb[10].mxu1 %vm356_vm0, %v343_v35 }
  0x63   : > { %1303 = vmatprep.mubr.msk.f32.mxu0 %vm356_vm0, %v328_v36  ;;  %1327 = vmatprep.mubr.msk.f32.mxu1 %vm356_vm0, %v344_v37 }
  0x66   : > { %1304 = vmatmul.mubr.msk.f32.gmra.mrb[12].mxu0 %vm356_vm0, %v329_v38  ;;  %1328 = vmatmul.mubr.msk.f32.gmra.mrb[12].mxu1 %vm356_vm0, %v345_v39 }
  0x67   : > { %1306 = vmatprep.mubr.msk.f32.mxu0 %vm356_vm0, %v330_v40  ;;  %1330 = vmatprep.mubr.msk.f32.mxu1 %vm356_vm0, %v346_v41 }
  0x6a   : > { %1307 = vmatmul.mubr.msk.f32.gmra.mrb[14].mxu0 %vm356_vm0, %v331_v42  ;;  %1331 = vmatmul.mubr.msk.f32.gmra.mrb[14].mxu1 %vm356_vm0, %v347_v43 }
 0x121   : > { %v1287_v44 = vpop.f32.mrb[0].mxu0  ;;  %v1311_v45 = vpop.f32.mrb[0].mxu1 }
 0x122   : > { %681 = vst [vmem:[#allocation3 + $0x8] sm:$0xff] %v1287_v44  ;;  %697 = vst [vmem:[#allocation3 + $0x88] sm:$0xff] %v1311_v45  ;;  %v519_v46 = vpop.f32.mrb[1].mxu0  ;;  %v599_v47 = vpop.f32.mrb[1].mxu1 }
 0x123   : > { %680 = vst [vmem:[#allocation3] sm:$0xff] %v519_v46  ;;  %696 = vst [vmem:[#allocation3 + $0x80] sm:$0xff] %v599_v47 }
 0x125   : > { %v1290_v48 = vpop.f32.mrb[2].mxu0  ;;  %v1314_v49 = vpop.f32.mrb[2].mxu1 }
 0x126   : > { %683 = vst [vmem:[#allocation3 + $0x18] sm:$0xff] %v1290_v48  ;;  %699 = vst [vmem:[#allocation3 + $0x98] sm:$0xff] %v1314_v49  ;;  %v529_v50 = vpop.f32.mrb[3].mxu0  ;;  %v609_v51 = vpop.f32.mrb[3].mxu1 }
 0x127   : > { %682 = vst [vmem:[#allocation3 + $0x10] sm:$0xff] %v529_v50  ;;  %698 = vst [vmem:[#allocation3 + $0x90] sm:$0xff] %v609_v51 }
 0x129   : > { %v1293_v52 = vpop.f32.mrb[4].mxu0  ;;  %v1317_v53 = vpop.f32.mrb[4].mxu1 }
 0x12a   : > { %685 = vst [vmem:[#allocation3 + $0x28] sm:$0xff] %v1293_v52  ;;  %701 = vst [vmem:[#allocation3 + $0xa8] sm:$0xff] %v1317_v53  ;;  %v539_v54 = vpop.f32.mrb[5].mxu0  ;;  %v619_v55 = vpop.f32.mrb[5].mxu1 }
 0x12b   : > { %684 = vst [vmem:[#allocation3 + $0x20] sm:$0xff] %v539_v54  ;;  %700 = vst [vmem:[#allocation3 + $0xa0] sm:$0xff] %v619_v55 }
 0x12d   : > { %v1296_v56 = vpop.f32.mrb[6].mxu0  ;;  %v1320_v57 = vpop.f32.mrb[6].mxu1 }
 0x12e   : > { %687 = vst [vmem:[#allocation3 + $0x38] sm:$0xff] %v1296_v56  ;;  %703 = vst [vmem:[#allocation3 + $0xb8] sm:$0xff] %v1320_v57  ;;  %v549_v58 = vpop.f32.mrb[7].mxu0  ;;  %v629_v59 = vpop.f32.mrb[7].mxu1 }
 0x12f   : > { %686 = vst [vmem:[#allocation3 + $0x30] sm:$0xff] %v549_v58  ;;  %702 = vst [vmem:[#allocation3 + $0xb0] sm:$0xff] %v629_v59 }
 0x131   : > { %v1299_v60 = vpop.f32.mrb[8].mxu0  ;;  %v1323_v61 = vpop.f32.mrb[8].mxu1 }
 0x132   : > { %689 = vst [vmem:[#allocation3 + $0x48] sm:$0xff] %v1299_v60  ;;  %705 = vst [vmem:[#allocation3 + $0xc8] sm:$0xff] %v1323_v61  ;;  %v559_v62 = vpop.f32.mrb[9].mxu0  ;;  %v639_v63 = vpop.f32.mrb[9].mxu1 }
 0x133   : > { %688 = vst [vmem:[#allocation3 + $0x40] sm:$0xff] %v559_v62  ;;  %704 = vst [vmem:[#allocation3 + $0xc0] sm:$0xff] %v639_v63 }
 0x135   : > { %v1302_v0 = vpop.f32.mrb[10].mxu0  ;;  %v1326_v1 = vpop.f32.mrb[10].mxu1 }
 0x136   : > { %691 = vst [vmem:[#allocation3 + $0x58] sm:$0xff] %v1302_v0  ;;  %707 = vst [vmem:[#allocation3 + $0xd8] sm:$0xff] %v1326_v1  ;;  %v569_v2 = vpop.f32.mrb[11].mxu0  ;;  %v649_v3 = vpop.f32.mrb[11].mxu1 }
 0x137   : > { %690 = vst [vmem:[#allocation3 + $0x50] sm:$0xff] %v569_v2  ;;  %706 = vst [vmem:[#allocation3 + $0xd0] sm:$0xff] %v649_v3 }
 0x139   : > { %v1305_v4 = vpop.f32.mrb[12].mxu0  ;;  %v1329_v5 = vpop.f32.mrb[12].mxu1 }
 0x13a   : > { %693 = vst [vmem:[#allocation3 + $0x68] sm:$0xff] %v1305_v4  ;;  %709 = vst [vmem:[#allocation3 + $0xe8] sm:$0xff] %v1329_v5  ;;  %v579_v6 = vpop.f32.mrb[13].mxu0  ;;  %v659_v7 = vpop.f32.mrb[13].mxu1 }
 0x13b   : > { %692 = vst [vmem:[#allocation3 + $0x60] sm:$0xff] %v579_v6  ;;  %708 = vst [vmem:[#allocation3 + $0xe0] sm:$0xff] %v659_v7 }
 0x13d   : > { %v1308_v8 = vpop.f32.mrb[14].mxu0  ;;  %v1332_v9 = vpop.f32.mrb[14].mxu1 }
 0x13e   : > { %695 = vst [vmem:[#allocation3 + $0x78] sm:$0xff] %v1308_v8  ;;  %711 = vst [vmem:[#allocation3 + $0xf8] sm:$0xff] %v1332_v9  ;;  %v589_v10 = vpop.f32.mrb[15].mxu0  ;;  %v669_v11 = vpop.f32.mrb[15].mxu1 }
 0x13f   : > { %694 = vst [vmem:[#allocation3 + $0x70] sm:$0xff] %v589_v10  ;;  %710 = vst [vmem:[#allocation3 + $0xf0] sm:$0xff] %v669_v11 }
 0x140 PF: > { %v730_v12 = vld [vmem:[#allocation3 + $0x80] sm:$0xff]  ;;  %v731_v13 = vld [vmem:[#allocation3 + $0x88] sm:$0xff]  ;;  %v732_v17 = vld [vmem:[#allocation3 + $0x90] sm:$0xff]  ;;  %s961_s7 = sshll.u32 %s1739_s12, 4  ;;  %p2031_p11 = scmp.ne.s32.totalorder %s2027_s28, 0  ;;  %s1966_s7 = int_to_ptr.vmem [resolvable:$true] %s961_s7 }
 0x141   : > { %v714_v14 = vld [vmem:[#allocation3] sm:$0xff]  ;;  %v1349_v15 = vpack.c.bf16 %v731_v13, %v730_v12  ;;  %v715_v16 = vld [vmem:[#allocation3 + $0x8] sm:$0xff]  ;;  %v733_v18 = vld [vmem:[#allocation3 + $0x98] sm:$0xff]  ;;  %s1501_s11 = scalar_lea.vmem %s1966_s7, 2048  ;;  %s1588_s21 = smov [#allocation7]  }
 0x142   : > { %v1351_v19 = vpack.c.bf16 %v715_v16, %v714_v14  ;;  %v1353_v20 = vpack.c.bf16 %v733_v18, %v732_v17  ;;  %v716_v21 = vld [vmem:[#allocation3 + $0x10] sm:$0xff]  ;;  %v717_v22 = vld [vmem:[#allocation3 + $0x18] sm:$0xff]  ;;  %v734_v23 = vld [vmem:[#allocation3 + $0xa0] sm:$0xff]  ;;  %p1502_p8 = scmp.ne.s32.totalorder %s1966_s7, %s1501_s11  ;;  %s1505_s24 = sshll.u32 %s1588_s21, 4  ;;  %s1506_s24 = int_to_ptr.vmem [resolvable:$false] %s1505_s24 }
 0x143   : > { %1350 = vmatprep.subr.bf16.mxu0 %v1349_v15  ;;  %1389 = vmatprep.subr.bf16.mxu1 %v1349_v15  ;;  %v735_v24 = vld [vmem:[#allocation3 + $0xa8] sm:$0xff]  ;;  %v1355_v25 = vpack.c.bf16 %v717_v22, %v716_v21  ;;  %v718_v27 = vld [vmem:[#allocation3 + $0x20] sm:$0xff]  ;;  %v736_v29 = vld [vmem:[#allocation3 + $0xb0] sm:$0xff]  ;;  %s1507_s25 = scalar_lea.vmem %s1506_s24, 4096  ;;  %p1508_p13 = scmp.lt.s32.totalorder %s1966_s7, %s1506_s24 }
 0x144   : > { %1352 = vmatpush3.bf16.msra.mxu0 %v1351_v19  ;;  %1397 = vmatpush3.bf16.msra.mxu1 %v1351_v19  ;;  %v1357_v26 = vpack.c.bf16 %v735_v24, %v734_v23  ;;  %v719_v28 = vld [vmem:[#allocation3 + $0x28] sm:$0xff]  ;;  %v737_v30 = vld [vmem:[#allocation3 + $0xb8] sm:$0xff]  ;;  %v720_v33 = vld [vmem:[#allocation3 + $0x30] sm:$0xff]  ;;  %p1503_p0 = pnand %p1502_p8, %p2031_p11  ;;  %p1509_p2 = scmp.lt.s32.totalorder %s1507_s25, %s1501_s11 }
 0x145   : > { %1354 = vmatprep.subr.bf16.mxu0 %v1353_v20  ;;  %1390 = vmatprep.subr.bf16.mxu1 %v1353_v20  ;;  %v1359_v31 = vpack.c.bf16 %v719_v28, %v718_v27  ;;  %v1361_v32 = vpack.c.bf16 %v737_v30, %v736_v29  ;;  %v721_v34 = vld [vmem:[#allocation3 + $0x38] sm:$0xff]  ;;  %v738_v35 = vld [vmem:[#allocation3 + $0xc0] sm:$0xff]  ;;  %v739_v36 = vld [vmem:[#allocation3 + $0xc8] sm:$0xff] }
 0x146   : > { %v747_v37 = vld [vmem:[%s1732_s26 + $0x8] sm:$0xff]  ;;  %v1363_v39 = vpack.c.bf16 %v721_v34, %v720_v33  ;;  %v1365_v40 = vpack.c.bf16 %v739_v36, %v738_v35  ;;  %v722_v41 = vld [vmem:[#allocation3 + $0x40] sm:$0xff]  ;;  %v740_v43 = vld [vmem:[#allocation3 + $0xd0] sm:$0xff]  ;;  %p1504_p6 = pneg %p1503_p0  ;;  %p1510_p5 = por %p1509_p2, %p1508_p13 }
 0x147   : > { %849 = vmatprep.mubr.f32.mxu0 %v747_v37  ;;  %v763_v38 = vld [vmem:[%s1732_s26 + $0x88] sm:$0xff]  ;;  %v741_v44 = vld [vmem:[#allocation3 + $0xd8] sm:$0xff]  ;;  %v724_v47 = vld [vmem:[#allocation3 + $0x50] sm:$0xff] }
 0x148   : > { %1356 = vmatpush3.bf16.msra.mxu0 %v1355_v25  ;;  %1398 = vmatpush3.bf16.msra.mxu1 %v1355_v25  ;;  %v723_v42 = vld [vmem:[#allocation3 + $0x48] sm:$0xff]  ;;  %v1369_v46 = vpack.c.bf16 %v741_v44, %v740_v43  ;;  %v725_v48 = vld [vmem:[#allocation3 + $0x58] sm:$0xff]  ;;  %v742_v49 = vld [vmem:[#allocation3 + $0xe0] sm:$0xff]  ;;  %p1511_p4 = pnand %p1510_p5, %p1504_p6 }
 0x149   : > { %1358 = vmatprep.subr.bf16.mxu0 %v1357_v26  ;;  %1391 = vmatprep.subr.bf16.mxu1 %v1357_v26  ;;  %v1367_v45 = vpack.c.bf16 %v723_v42, %v722_v41  ;;  %v743_v50 = vld [vmem:[#allocation3 + $0xe8] sm:$0xff]  ;;  %v1371_v51 = vpack.c.bf16 %v725_v48, %v724_v47  ;;  %v726_v53 = vld [vmem:[#allocation3 + $0x60] sm:$0xff]  ;;  %v744_v55 = vld [vmem:[#allocation3 + $0xf0] sm:$0xff] }
 0x14a   : > { %889 = vmatprep.mubr.f32.mxu1 %v763_v38  ;;  %v1373_v52 = vpack.c.bf16 %v743_v50, %v742_v49  ;;  %v727_v54 = vld [vmem:[#allocation3 + $0x68] sm:$0xff]  ;;  %v745_v56 = vld [vmem:[#allocation3 + $0xf8] sm:$0xff]  ;;  %v728_v59 = vld [vmem:[#allocation3 + $0x70] sm:$0xff] }
 0x14b   : > { %v1375_v57 = vpack.c.bf16 %v727_v54, %v726_v53  ;;  %v1377_v58 = vpack.c.bf16 %v745_v56, %v744_v55  ;;  %v729_v60 = vld [vmem:[#allocation3 + $0x78] sm:$0xff]  ;;  %v746_v62 = vld [vmem:[%s1732_s26] sm:$0xff]  ;;  %v748_v2 = vld [vmem:[%s1732_s26 + $0x10] sm:$0xff] }
 0x14c   : > { %1360 = vmatpush3.bf16.msra.mxu0 %v1359_v31  ;;  %1399 = vmatpush3.bf16.msra.mxu1 %v1359_v31  ;;  %v1379_v61 = vpack.c.bf16 %v729_v60, %v728_v59  ;;  %v762_v63 = vld [vmem:[%s1732_s26 + $0x80] sm:$0xff]  ;;  %v749_v0 = vld [vmem:[%s1732_s26 + $0x18] sm:$0xff]  ;;  %v764_v3 = vld [vmem:[%s1732_s26 + $0x90] sm:$0xff] }
 0x14d   : > { %1362 = vmatprep.subr.bf16.mxu0 %v1361_v32  ;;  %1392 = vmatprep.subr.bf16.mxu1 %v1361_v32  ;;  %v765_v1 = vld [vmem:[%s1732_s26 + $0x98] sm:$0xff]  ;;  %v751_v4 = vld [vmem:[%s1732_s26 + $0x28] sm:$0xff]  ;;  %v750_v6 = vld [vmem:[%s1732_s26 + $0x20] sm:$0xff] }
 0x14e   : > { %v767_v5 = vld [vmem:[%s1732_s26 + $0xa8] sm:$0xff]  ;;  %v766_v7 = vld [vmem:[%s1732_s26 + $0xa0] sm:$0xff]  ;;  %v753_v8 = vld [vmem:[%s1732_s26 + $0x38] sm:$0xff] }
 0x14f   : > { %v769_v9 = vld [vmem:[%s1732_s26 + $0xb8] sm:$0xff]  ;;  %v752_v10 = vld [vmem:[%s1732_s26 + $0x30] sm:$0xff]  ;;  %v755_v12 = vld [vmem:[%s1732_s26 + $0x48] sm:$0xff] }
 0x150   : > { %1364 = vmatpush3.bf16.msra.mxu0 %v1363_v39  ;;  %1400 = vmatpush3.bf16.msra.mxu1 %v1363_v39  ;;  %v768_v11 = vld [vmem:[%s1732_s26 + $0xb0] sm:$0xff]  ;;  %v771_v13 = vld [vmem:[%s1732_s26 + $0xc8] sm:$0xff]  ;;  %v754_v14 = vld [vmem:[%s1732_s26 + $0x40] sm:$0xff] }
 0x151   : > { %1366 = vmatprep.subr.bf16.mxu0 %v1365_v40  ;;  %1393 = vmatprep.subr.bf16.mxu1 %v1365_v40  ;;  %v770_v15 = vld [vmem:[%s1732_s26 + $0xc0] sm:$0xff]  ;;  %v757_v16 = vld [vmem:[%s1732_s26 + $0x58] sm:$0xff]  ;;  %v756_v18 = vld [vmem:[%s1732_s26 + $0x50] sm:$0xff] }
 0x152   : > { %v773_v17 = vld [vmem:[%s1732_s26 + $0xd8] sm:$0xff]  ;;  %v772_v19 = vld [vmem:[%s1732_s26 + $0xd0] sm:$0xff]  ;;  %v759_v20 = vld [vmem:[%s1732_s26 + $0x68] sm:$0xff] }
 0x153   : > { %v775_v21 = vld [vmem:[%s1732_s26 + $0xe8] sm:$0xff]  ;;  %v758_v22 = vld [vmem:[%s1732_s26 + $0x60] sm:$0xff]  ;;  %v761_v24 = vld [vmem:[%s1732_s26 + $0x78] sm:$0xff] }
 0x154   : > { %1368 = vmatpush3.bf16.msra.mxu0 %v1367_v45  ;;  %1401 = vmatpush3.bf16.msra.mxu1 %v1367_v45  ;;  %v774_v23 = vld [vmem:[%s1732_s26 + $0xe0] sm:$0xff]  ;;  %v777_v25 = vld [vmem:[%s1732_s26 + $0xf8] sm:$0xff]  ;;  %v760_v26 = vld [vmem:[%s1732_s26 + $0x70] sm:$0xff] }
 0x155   : > { %1370 = vmatprep.subr.bf16.mxu0 %v1369_v46  ;;  %1394 = vmatprep.subr.bf16.mxu1 %v1369_v46  ;;  %v776_v27 = vld [vmem:[%s1732_s26 + $0xf0] sm:$0xff]  ;;  %v1929_v30 = vld [vmem:[%s2022_s3] ss:$0 sm:$0xff]  ;;  %s1148_s26 = sshll.u32 %s1575_s18, 11  ;;  %s947_s18 = scalar_lea.sflag [#allocation6], %s1728_s22 }
 0x156   : > { %s1964_s9 = scalar_lea.hbm %s2023_s4, %s1148_s26 }
 0x158   : > { %1372 = vmatpush3.bf16.msra.mxu0 %v1371_v51  ;;  %1402 = vmatpush3.bf16.msra.mxu1 %v1371_v51 }
 0x159   : > { %1374 = vmatprep.subr.bf16.mxu0 %v1373_v52  ;;  %1395 = vmatprep.subr.bf16.mxu1 %v1373_v52 }
 0x15c   : > { %1376 = vmatpush3.bf16.msra.mxu0 %v1375_v57  ;;  %1403 = vmatpush3.bf16.msra.mxu1 %v1375_v57 }
 0x15d   : > { %1378 = vmatprep.subr.bf16.mxu0 %v1377_v58  ;;  %1396 = vmatprep.subr.bf16.mxu1 %v1377_v58 }
 0x160   : > { %1380 = vmatpush3.bf16.msra.mxu0 %v1379_v61  ;;  %1404 = vmatpush3.bf16.msra.mxu1 %v1379_v61 }
 0x163   : > { %850 = vmatmul.mubr.f32.vlgmr.msra.gmra.mrb[0].mxu0 %v746_v62  ;;  %890 = vmatmul.mubr.f32.vlgmr.msra.gmra.mrb[0].mxu1 %v762_v63 }
 0x164   : > { %854 = vmatprep.mubr.f32.mxu0 %v749_v0  ;;  %894 = vmatprep.mubr.f32.mxu1 %v765_v1 }
 0x167   : > { %855 = vmatmul.mubr.f32.gmra.mrb[2].mxu0 %v748_v2  ;;  %895 = vmatmul.mubr.f32.gmra.mrb[2].mxu1 %v764_v3 }
 0x168   : > { %859 = vmatprep.mubr.f32.mxu0 %v751_v4  ;;  %899 = vmatprep.mubr.f32.mxu1 %v767_v5 }
 0x16b   : > { %860 = vmatmul.mubr.f32.gmra.mrb[4].mxu0 %v750_v6  ;;  %900 = vmatmul.mubr.f32.gmra.mrb[4].mxu1 %v766_v7 }
 0x16c   : > { %864 = vmatprep.mubr.f32.mxu0 %v753_v8  ;;  %904 = vmatprep.mubr.f32.mxu1 %v769_v9 }
 0x16f   : > { %865 = vmatmul.mubr.f32.gmra.mrb[6].mxu0 %v752_v10  ;;  %905 = vmatmul.mubr.f32.gmra.mrb[6].mxu1 %v768_v11 }
 0x170   : > { %869 = vmatprep.mubr.f32.mxu0 %v755_v12  ;;  %909 = vmatprep.mubr.f32.mxu1 %v771_v13 }
 0x173   : > { %870 = vmatmul.mubr.f32.gmra.mrb[8].mxu0 %v754_v14  ;;  %910 = vmatmul.mubr.f32.gmra.mrb[8].mxu1 %v770_v15 }
 0x174   : > { %874 = vmatprep.mubr.f32.mxu0 %v757_v16  ;;  %914 = vmatprep.mubr.f32.mxu1 %v773_v17 }
 0x177   : > { %875 = vmatmul.mubr.f32.gmra.mrb[10].mxu0 %v756_v18  ;;  %915 = vmatmul.mubr.f32.gmra.mrb[10].mxu1 %v772_v19 }
 0x178   : > { %879 = vmatprep.mubr.f32.mxu0 %v759_v20  ;;  %919 = vmatprep.mubr.f32.mxu1 %v775_v21 }
 0x17b   : > { %880 = vmatmul.mubr.f32.gmra.mrb[12].mxu0 %v758_v22  ;;  %920 = vmatmul.mubr.f32.gmra.mrb[12].mxu1 %v774_v23 }
 0x17c   : > { %884 = vmatprep.mubr.f32.mxu0 %v761_v24  ;;  %924 = vmatprep.mubr.f32.mxu1 %v777_v25 }
 0x17f   : > { %885 = vmatmul.mubr.f32.gmra.mrb[14].mxu0 %v760_v26  ;;  %925 = vmatmul.mubr.f32.gmra.mrb[14].mxu1 %v776_v27 }
 0x236   : > { %v1221_v28 = vpop.f32.mrb[0].mxu0  ;;  %v1245_v29 = vpop.f32.mrb[0].mxu1 }
 0x237   : > { %v1222_v31 = vpop.f32.mrb[1].mxu0  ;;  %v1246_v32 = vpop.f32.mrb[1].mxu1 }
 0x238   : > { %v1223_v33 = vadd.f32 %v1222_v31, %v1221_v28  ;;  %v1247_v34 = vadd.f32 %v1246_v32, %v1245_v29 }
 0x23a   : > { %v852_v35 = vadd.f32 %v1223_v33, %v1929_v30  ;;  %v892_v36 = vadd.f32 %v1247_v34, %v1929_v30  ;;  %v1224_v37 = vpop.f32.mrb[2].mxu0  ;;  %v1248_v38 = vpop.f32.mrb[2].mxu1 }
 0x23b   : > { %v1225_v39 = vpop.f32.mrb[3].mxu0  ;;  %v1249_v40 = vpop.f32.mrb[3].mxu1 }
 0x23c   : > { %930 = vst [vmem:[%s1739_s12] sm:$0xff] %v852_v35  ;;  %938 = vst [vmem:[%s1739_s12 + $0x40] sm:$0xff] %v892_v36  ;;  %v1226_v41 = vadd.f32 %v1225_v39, %v1224_v37  ;;  %v1250_v42 = vadd.f32 %v1249_v40, %v1248_v38 }
 0x23e   : > { %v857_v43 = vadd.f32 %v1226_v41, %v1929_v30  ;;  %v897_v44 = vadd.f32 %v1250_v42, %v1929_v30  ;;  %v1227_v45 = vpop.f32.mrb[4].mxu0  ;;  %v1251_v46 = vpop.f32.mrb[4].mxu1 }
 0x23f   : > { %v1228_v47 = vpop.f32.mrb[5].mxu0  ;;  %v1252_v48 = vpop.f32.mrb[5].mxu1 }
 0x240   : > { %931 = vst [vmem:[%s1739_s12 + $0x8] sm:$0xff] %v857_v43  ;;  %939 = vst [vmem:[%s1739_s12 + $0x48] sm:$0xff] %v897_v44  ;;  %v1229_v49 = vadd.f32 %v1228_v47, %v1227_v45  ;;  %v1253_v50 = vadd.f32 %v1252_v48, %v1251_v46 }
 0x242   : > { %v862_v51 = vadd.f32 %v1229_v49, %v1929_v30  ;;  %v902_v52 = vadd.f32 %v1253_v50, %v1929_v30  ;;  %v1230_v53 = vpop.f32.mrb[6].mxu0  ;;  %v1254_v54 = vpop.f32.mrb[6].mxu1 }
 0x243   : > { %v1231_v55 = vpop.f32.mrb[7].mxu0  ;;  %v1255_v56 = vpop.f32.mrb[7].mxu1 }
 0x244   : > { %932 = vst [vmem:[%s1739_s12 + $0x10] sm:$0xff] %v862_v51  ;;  %940 = vst [vmem:[%s1739_s12 + $0x50] sm:$0xff] %v902_v52  ;;  %v1232_v57 = vadd.f32 %v1231_v55, %v1230_v53  ;;  %v1256_v58 = vadd.f32 %v1255_v56, %v1254_v54 }
 0x246   : > { %v867_v59 = vadd.f32 %v1232_v57, %v1929_v30  ;;  %v907_v60 = vadd.f32 %v1256_v58, %v1929_v30  ;;  %v1233_v61 = vpop.f32.mrb[8].mxu0  ;;  %v1257_v62 = vpop.f32.mrb[8].mxu1 }
 0x247   : > { %v1234_v63 = vpop.f32.mrb[9].mxu0  ;;  %v1258_v0 = vpop.f32.mrb[9].mxu1 }
 0x248   : > { %933 = vst [vmem:[%s1739_s12 + $0x18] sm:$0xff] %v867_v59  ;;  %941 = vst [vmem:[%s1739_s12 + $0x58] sm:$0xff] %v907_v60  ;;  %v1235_v1 = vadd.f32 %v1234_v63, %v1233_v61  ;;  %v1259_v2 = vadd.f32 %v1258_v0, %v1257_v62 }
 0x24a   : > { %v872_v3 = vadd.f32 %v1235_v1, %v1929_v30  ;;  %v912_v4 = vadd.f32 %v1259_v2, %v1929_v30  ;;  %v1236_v5 = vpop.f32.mrb[10].mxu0  ;;  %v1260_v6 = vpop.f32.mrb[10].mxu1 }
 0x24b   : > { %v1237_v7 = vpop.f32.mrb[11].mxu0  ;;  %v1261_v8 = vpop.f32.mrb[11].mxu1 }
 0x24c   : > { %934 = vst [vmem:[%s1739_s12 + $0x20] sm:$0xff] %v872_v3  ;;  %942 = vst [vmem:[%s1739_s12 + $0x60] sm:$0xff] %v912_v4  ;;  %v1238_v9 = vadd.f32 %v1237_v7, %v1236_v5  ;;  %v1262_v10 = vadd.f32 %v1261_v8, %v1260_v6 }
 0x24e   : > { %v877_v11 = vadd.f32 %v1238_v9, %v1929_v30  ;;  %v917_v12 = vadd.f32 %v1262_v10, %v1929_v30  ;;  %v1239_v13 = vpop.f32.mrb[12].mxu0  ;;  %v1263_v14 = vpop.f32.mrb[12].mxu1 }
 0x24f   : > { %v1240_v15 = vpop.f32.mrb[13].mxu0  ;;  %v1264_v16 = vpop.f32.mrb[13].mxu1 }
 0x250   : > { %935 = vst [vmem:[%s1739_s12 + $0x28] sm:$0xff] %v877_v11  ;;  %943 = vst [vmem:[%s1739_s12 + $0x68] sm:$0xff] %v917_v12  ;;  %v1241_v17 = vadd.f32 %v1240_v15, %v1239_v13  ;;  %v1265_v18 = vadd.f32 %v1264_v16, %v1263_v14 }
 0x252   : > { %v882_v19 = vadd.f32 %v1241_v17, %v1929_v30  ;;  %v922_v20 = vadd.f32 %v1265_v18, %v1929_v30  ;;  %v1242_v21 = vpop.f32.mrb[14].mxu0  ;;  %v1266_v22 = vpop.f32.mrb[14].mxu1 }
 0x253   : > { %v1243_v23 = vpop.f32.mrb[15].mxu0  ;;  %v1267_v24 = vpop.f32.mrb[15].mxu1 }
 0x254   : > { %936 = vst [vmem:[%s1739_s12 + $0x30] sm:$0xff] %v882_v19  ;;  %944 = vst [vmem:[%s1739_s12 + $0x70] sm:$0xff] %v922_v20  ;;  %v1244_v25 = vadd.f32 %v1243_v23, %v1242_v21  ;;  %v1268_v26 = vadd.f32 %v1267_v24, %v1266_v22 }
 0x256   : > { %v887_v27 = vadd.f32 %v1244_v25, %v1929_v30  ;;  %v927_v28 = vadd.f32 %v1268_v26, %v1929_v30 }
 0x258   : > { %937 = vst [vmem:[%s1739_s12 + $0x38] sm:$0xff] %v887_v27  ;;  %945 = vst [vmem:[%s1739_s12 + $0x78] sm:$0xff] %v927_v28 }
 0x259   : > { %1514 = shalt.err (!%p1511_p4)
}
 0x25a   : > { %s1515_s12 = scalar_lea.hbm %s1964_s9, 2048  ;;  %s1519_s14 = scalar_lea.hbm %s2023_s4, 4096 }
 0x25b   : > { %p1516_p7 = scmp.ne.s32.totalorder %s1964_s9, %s1515_s12  ;;  %p1520_p1 = scmp.lt.u32.totalorder %s1964_s9, %s2023_s4 }
 0x25c   : > { %p1521_p3 = scmp.lt.u32.totalorder %s1519_s14, %s1515_s12  ;;  %p1523_p8 = scmp.lt.u32.totalorder %s1515_s12, %s1964_s9 }
 0x25d   : > { %p1517_p10 = pnand %p1516_p7, %p2031_p11 }
 0x25e   : > { %p1522_p9 = por %p1521_p3, %p1520_p1 }
 0x25f   : > { %p1518_p12 = pneg %p1517_p10 }
 0x260   : > { %p1524_p0 = por %p1523_p8, %p1522_p9 }
 0x262   : > { %p1525_p6 = pnand %p1524_p0, %p1518_p12 }
 0x264   : > { %1528 = shalt.err (!%p1525_p6)
}
 0x265   : > { %s1589_s26 = smov 128   ;;  %s1590_s8 = smov 8  }
 0x266   : > { %1407 = dma.vmem_to_hbm [thread:$0]  (%p2031_p11), %s1966_s7, 2048, %s1964_s9, %s947_s18, %s1589_s26, %s1589_s26, %s1590_s8  }
 0x267 PF: > { %s976_s27 = sand.u32 1, %s1563_s15   ;;  %p2032_p13 = scmp.ne.s32.totalorder %s2028_s30, 0 }
 0x268   : > { %p2033_p2 = scmp.ge.s32.totalorder %s1583_s20, 2  ;;  %s977_s11 = scalar_lea.sflag [#allocation6], %s976_s27 }
 0x26a   : > { %p1414_p5 = pnand %p2033_p2, %p2032_p13 }
 0x26c   : > { %1558 = dma.done.wait (!%p1414_p5), %s977_s11, 2048  }
 0x26d   : > { %1560 = vsyncadd (!%p1414_p5), %s977_s11, 4294965248  ;;  %s20_s20 = sadd.s32 1, %s1583_s20   ;;  %s2034_s15 = smov %s1567_s16 }
 0x26e   : > { %p17_p4 = scmp.ge.s32.totalorder %s20_s20, 4   ;;  %s2035_s16 = smov %s1571_s17 }
 0x26f   : > { %s2036_s17 = smov %s1672_s29  ;;  %s2037_s18 = smov %s1579_s19 }
 0x270   : > { %s2038_s19 = smov %s2040_s23  ;;  %19 = sbr.rel (!%p17_p4) target bundleno = 6 (0x6), region = 96 }
 0x277   :  { %982 = vsyncpa [#allocation5], 1 }
 0x278   :  { %984 = vsyncpa [#allocation5 + $0x1], 1 }
 0x279   :  { %985 = vsyncpa [#allocation6], 1 }
 0x27a   :  { %987 = vsyncpa [#allocation6 + $0x1], 1 }

</bundles_post_ra>
